<compile_context>
chip_gen: v5e
topology: v5e:2x2
jax: 0.10.0
libtpu: 0.0.40
codegen_flags: <defaults>
</compile_context>

<pallas_src>
import jax
import jax.numpy as jnp
from jax.experimental import pallas as pl
from jax.experimental.pallas import tpu as pltpu

NUM_EXPERTS = 8


# ----------------------------- Pallas kernel ------------------------------ #
def _gate_kernel(logits_ref, counts_ref, acc_ref):
    # logits_ref: (E, tile_T) float32 tile, experts on sublanes, tokens on lanes
    # counts_ref: (E, 1)      int32 per-core per-expert counts (natural order)
    # acc_ref:    (E, tile_T) int32 element-wise one-hot accumulator (VMEM scratch)
    i = pl.program_id(1)

    @pl.when(i == 0)
    def _():
        acc_ref[...] = jnp.zeros_like(acc_ref)

    x = logits_ref[...].astype(jnp.float32)                 # (E, tile_T)
    n_exp = x.shape[0]

    # argmax over experts (sublane axis), first-max tie-break (== torch/jnp argmax)
    maxv = jnp.max(x, axis=0, keepdims=True)                # (1, tile_T)
    eidx = jax.lax.broadcasted_iota(jnp.int32, x.shape, 0)  # expert index per row
    cand = jnp.where(x == maxv, eidx, jnp.int32(n_exp))
    amax = jnp.min(cand, axis=0, keepdims=True)             # (1, tile_T)

    # one_hot(argmax) accumulated element-wise (no per-tile cross-lane reduce)
    acc_ref[...] += (eidx == amax).astype(jnp.int32)

    # single cross-lane (token) reduction at the last step of this core's range
    @pl.when(i == pl.num_programs(1) - 1)
    def _():
        counts_ref[...] = jnp.sum(acc_ref[...], axis=1, keepdims=True)


def _choose_tile_tokens(num_tokens: int, max_tile: int = 2048) -> int:
    """Largest multiple-of-128 token tile <= max_tile that divides num_tokens."""
    if num_tokens <= max_tile or num_tokens % 128 != 0:
        return num_tokens                      # single block == full array (legal)
    for cand in range(max_tile, 127, -128):
        if num_tokens % cand == 0:
            return cand
    return num_tokens


def random_gating_pallas(logits, perm, *, max_tile_tokens: int = 2048):
    """expert_selection counts. logits: (T, E) float, perm: (E,) int."""
    T, E = logits.shape
    # lane-dense layout: experts -> sublanes, tokens -> lanes
    logits_t = jnp.asarray(logits, jnp.float32).T            # (E, T)

    tile_t = _choose_tile_tokens(T, max_tile_tokens)
    total_steps = T // tile_t
    ncores = 2 if (total_steps >= 2 and total_steps % 2 == 0) else 1
    steps_per_core = total_steps // ncores

    partial = pl.pallas_call(
        _gate_kernel,
        out_shape=jax.ShapeDtypeStruct((ncores, E, 1), jnp.int32),
        grid_spec=pltpu.PrefetchScalarGridSpec(
            num_scalar_prefetch=0,
            grid=(ncores, steps_per_core),
            in_specs=[
                pl.BlockSpec((E, tile_t),
                             lambda c, i: (0, c * steps_per_core + i)),
            ],
            out_specs=pl.BlockSpec((None, E, 1), lambda c, i: (c, 0, 0)),
            scratch_shapes=[pltpu.VMEM((E, tile_t), jnp.int32)],
        ),
        compiler_params=pltpu.CompilerParams(
            # token-reduction axis is "arbitrary"; core axis is "parallel"
            dimension_semantics=("parallel", "arbitrary")),
    )(logits_t)

    counts_natural = jnp.sum(partial[:, :, 0], axis=0)        # (E,) natural order
    # mask1[:, perm].sum(0) == counts_natural[perm]
    return counts_natural[jnp.asarray(perm, jnp.int32)]


# -------------------------- random glue (plain JAX) ------------------------ #
def power_law_logit(key, dim, num_experts):
    """JAX port of RandomGate.power_law_logit (random synthetic logits)."""
    k_cat, k_rate, k_pois = jax.random.split(key, 3)
    exponents = jnp.arange(1, num_experts + 1, dtype=jnp.float32) ** (-3.0)
    p = exponents / jnp.sum(exponents)
    # multinomial with replacement per row == categorical samples per row
    sampled = jax.random.categorical(k_cat, jnp.log(p), shape=(dim, num_experts))
    rates = jax.random.uniform(k_rate, (dim, num_experts), dtype=jnp.float32)
    pois = jax.random.poisson(k_pois, rates).astype(jnp.float32)
    rows = jnp.arange(dim)[:, None]
    logits = jnp.zeros((dim, num_experts), jnp.float32)
    logits = logits.at[rows, sampled].set(pois[rows, sampled])
    return logits


class RandomGatePallas:
    def __init__(self, model_dim: int, num_experts: int):
        self.num_experts = num_experts

    def __call__(self, x, key):
        k_logit, k_perm = jax.random.split(key)
        logits = power_law_logit(k_logit, x.shape[0], self.num_experts)
        perm = jax.random.permutation(k_perm, self.num_experts)
        counts = random_gating_pallas(logits, perm)
        # expert_selection as a list of python ints (matches the .item() loop)
        return [int(c) for c in jax.device_get(counts)]


# ------------------------------- reference -------------------------------- #
def _reference_counts(logits, perm):
    gates = jax.nn.softmax(logits.astype(jnp.float32), axis=1)
    idx = jnp.argmax(gates, axis=1)
    mask1 = jax.nn.one_hot(idx, logits.shape[1], dtype=jnp.int32)
    mask1 = mask1[:, perm]
    return jnp.sum(mask1, axis=0)


if __name__ == "__main__":
    key = jax.random.PRNGKey(0)
    num_tokens, model_dim = 16, 32            # num_tokens % num_experts == 0
    x = jax.random.normal(jax.random.fold_in(key, 1), (num_tokens, model_dim),
                          dtype=jnp.float32)

    # --- small path: single tile (block equals full array dims) ---
    k_logit, k_perm = jax.random.split(jax.random.fold_in(key, 2))
    logits = power_law_logit(k_logit, num_tokens, NUM_EXPERTS)
    perm = jax.random.permutation(k_perm, NUM_EXPERTS)
    counts = jax.block_until_ready(random_gating_pallas(logits, perm))
    ref = _reference_counts(logits, perm)
    assert counts.shape == (NUM_EXPERTS,)
    assert int(jnp.sum(counts)) == num_tokens
    assert bool(jnp.all(counts == ref))

    # --- tiled + 2-way "parallel" path: 2048-token lane-dense tiles, grid=(2,2) ---
    big_T = 8192
    kb_logit, kb_perm = jax.random.split(jax.random.fold_in(key, 3))
    big_logits = power_law_logit(kb_logit, big_T, NUM_EXPERTS)
    big_perm = jax.random.permutation(kb_perm, NUM_EXPERTS)
    big_counts = jax.block_until_ready(random_gating_pallas(big_logits, big_perm))
    big_ref = _reference_counts(big_logits, big_perm)
    assert int(jnp.sum(big_counts)) == big_T
    assert bool(jnp.all(big_counts == big_ref))

    # --- full forward path (returns a python list like the torch module) ---
    gate = RandomGatePallas(model_dim, NUM_EXPERTS)
    expert_selection = gate(x, jax.random.fold_in(key, 2))
    assert len(expert_selection) == NUM_EXPERTS
    assert sum(expert_selection) == num_tokens

    print("KERNEL_OK")
</pallas_src>

<mosaic_0001>
module attributes {stable_mosaic.version = 11 : i64} {
  func.func @_gate_kernel(%arg0: i32, %arg1: i32, %arg2: memref<8x16xf32, #tpu.memory_space<vmem>>, %arg3: memref<1x8x1xi32, #tpu.memory_space<vmem>>, %arg4: memref<8x16xi32, #tpu.memory_space<vmem>>) attributes {dimension_semantics = [#tpu.dimension_semantics<parallel>, #tpu.dimension_semantics<arbitrary>], iteration_bounds = array<i64: 1, 1>, scalar_prefetch = 0 : i64, scratch_operands = 1 : i64, tpu.core_type = #tpu.core_type<tc>, window_params = [{transform_indices = @transform_0, window_bounds = array<i64: 8, 16>}, {transform_indices = @transform_1, window_bounds = array<i64: 1, 8, 1>}]} {
    %c0_i32 = arith.constant 0 : i32
    %0 = arith.cmpi eq, %arg1, %c0_i32 : i32
    %1 = arith.extui %0 : i1 to i32
    %c0_i32_0 = arith.constant 0 : i32
    %2 = arith.cmpi ne, %1, %c0_i32_0 : i32
    scf.if %2 {
      %c0_i32_9 = arith.constant 0 : i32
      %22 = vector.broadcast %c0_i32_9 : i32 to vector<8x16xi32>
      %c0_10 = arith.constant 0 : index
      %c0_11 = arith.constant 0 : index
      %23 = vector.load %arg4[%c0_10, %c0_11] : memref<8x16xi32, #tpu.memory_space<vmem>>, vector<8x16xi32>
      tpu.vector_store %arg4[%c0_10, %c0_11], %22 {strides = array<i32>} : memref<8x16xi32, #tpu.memory_space<vmem>>, vector<8x16xi32>,
    } else {
    }
    %c0 = arith.constant 0 : index
    %c0_1 = arith.constant 0 : index
    %3 = vector.load %arg2[%c0, %c0_1] : memref<8x16xf32, #tpu.memory_space<vmem>>, vector<8x16xf32>
    %cst = arith.constant dense<0xFF800000> : vector<16xf32>
    %4 = vector.multi_reduction <maximumf>, %3, %cst [0] : vector<8x16xf32> to vector<16xf32>
    %5 = vector.shape_cast %4 : vector<16xf32> to vector<1x16xf32>
    %6 = tpu.iota {dimensions = array<i32: 0>} : vector<8x16xi32>
    %7 = vector.broadcast %5 : vector<1x16xf32> to vector<8x16xf32>
    %8 = arith.cmpf oeq, %3, %7 : vector<8x16xf32>
    %c8_i32 = arith.constant 8 : i32
    %9 = vector.broadcast %c8_i32 : i32 to vector<8x16xi32>
    %10 = arith.select %8, %6, %9 : vector<8x16xi1>, vector<8x16xi32>
    %cst_2 = arith.constant dense<2147483647> : vector<16xi32>
    %11 = vector.multi_reduction <minsi>, %10, %cst_2 [0] : vector<8x16xi32> to vector<16xi32>
    %12 = vector.shape_cast %11 : vector<16xi32> to vector<1x16xi32>
    %c0_3 = arith.constant 0 : index
    %c0_4 = arith.constant 0 : index
    %13 = vector.load %arg4[%c0_3, %c0_4] : memref<8x16xi32, #tpu.memory_space<vmem>>, vector<8x16xi32>
    %14 = vector.broadcast %12 : vector<1x16xi32> to vector<8x16xi32>
    %15 = arith.cmpi eq, %6, %14 : vector<8x16xi32>
    %16 = arith.extui %15 : vector<8x16xi1> to vector<8x16xi32>
    %17 = arith.addi %13, %16 : vector<8x16xi32>
    %c0_5 = arith.constant 0 : index
    %c0_6 = arith.constant 0 : index
    %18 = vector.load %arg4[%c0_5, %c0_6] : memref<8x16xi32, #tpu.memory_space<vmem>>, vector<8x16xi32>
    tpu.vector_store %arg4[%c0_5, %c0_6], %17 {strides = array<i32>} : memref<8x16xi32, #tpu.memory_space<vmem>>, vector<8x16xi32>,
    %c0_i32_7 = arith.constant 0 : i32
    %19 = arith.cmpi eq, %arg1, %c0_i32_7 : i32
    %20 = arith.extui %19 : i1 to i32
    %c0_i32_8 = arith.constant 0 : i32
    %21 = arith.cmpi ne, %20, %c0_i32_8 : i32
    scf.if %21 {
      %c0_9 = arith.constant 0 : index
      %c0_10 = arith.constant 0 : index
      %22 = vector.load %arg4[%c0_9, %c0_10] : memref<8x16xi32, #tpu.memory_space<vmem>>, vector<8x16xi32>
      %cst_11 = arith.constant dense<0> : vector<8xi32>
      %23 = vector.multi_reduction <add>, %22, %cst_11 [1] : vector<8x16xi32> to vector<8xi32>
      %24 = vector.shape_cast %23 : vector<8xi32> to vector<8x1xi32>
      %c0_12 = arith.constant 0 : index
      %c0_13 = arith.constant 0 : index
      %c0_14 = arith.constant 0 : index
      %25 = vector.load %arg3[%c0_12, %c0_13, %c0_14] : memref<1x8x1xi32, #tpu.memory_space<vmem>>, vector<1x8x1xi32>
      %26 = vector.shape_cast %25 : vector<1x8x1xi32> to vector<8x1xi32>
      %27 = vector.shape_cast %24 : vector<8x1xi32> to vector<1x8x1xi32>
      tpu.vector_store %arg3[%c0_12, %c0_13, %c0_14], %27 {strides = array<i32>} : memref<1x8x1xi32, #tpu.memory_space<vmem>>, vector<1x8x1xi32>,
    } else {
    }
    return
  }
  func.func @transform_0(%arg0: i32, %arg1: i32) -> (i32, i32) {
    %c1_i32 = arith.constant 1 : i32
    %0 = arith.muli %arg0, %c1_i32 : i32
    %1 = arith.addi %0, %arg1 : i32
    %c0_i32 = arith.constant 0 : i32
    %c0_i32_0 = arith.constant 0 : i32
    return %c0_i32, %1 : i32, i32
  }
  func.func @transform_1(%arg0: i32, %arg1: i32) -> (i32, i32, i32) {
    %c0_i32 = arith.constant 0 : i32
    %c0_i32_0 = arith.constant 0 : i32
    %c0_i32_1 = arith.constant 0 : i32
    return %arg0, %c0_i32, %c0_i32_0 : i32, i32, i32
  }
}

</mosaic_0001>

<bundles_post_ra>
// kernel: tpu_custom_call.1
= control target key start
LH: loop header
LB: loop body
LE: loop exit
PB: predicated region body
PF: predicated region fallthrough
CT: control target
= control target key end

     0   :  { %6 = vsyncpa [#allocation4], 0  ;;  %s112_s9 = smov [#allocation3]   ;;  %s135_s0 = inlined_call_operand.hbm [shape: f32[8,16], index: 0, kind: input, shape index: {}]   ;;  %s136_s1 = inlined_call_operand.vmem [shape: s32[1,8,1], index: 1, kind: output, shape index: {}]  }
   0x1   :  { %s15_s8 = sshll.u32 %s135_s0, 4  ;;  %s17_s10 = sshll.u32 %s112_s9, 4  ;;  %s16_s8 = int_to_ptr.hbm [resolvable:$true] %s15_s8  ;;  %s18_s10 = int_to_ptr.vmem [resolvable:$true] %s17_s10 }
   0x2   :  { %20 = dma.hbm_to_vmem [thread:$0]  %s16_s8, 128, %s18_s10, [#allocation4]  }
   0x3   :  { %110 = dma.done.wait [#allocation4], 128  }
   0x4   :  { %111 = vsyncadd [#allocation4], 4294967168  ;;  %vm30_vm0 = vcmask 130048   ;;  %v113_v0 = vmov 0   ;;  %v32_v1 = vld [vmem:[#allocation3] sm:$0xff]  ;;  %v41_v6 = vlaneseq  ;;  %vm77_vm6 = vcmask 7168  }
   0x5   :  { %31 = vst.msk [vmem:[#allocation2] sm:$0xff] %vm30_vm0, %v113_v0  ;;  %v34_v2 = vsel %vm30_vm0, %v32_v1, -inf }
   0x6   :  { %v35_v3 = vrot.slane %v34_v2, 4  ;;  %v42_v9 = vshrl.u32 %v41_v6, 7 }
   0x8   :  { %v36_v4 = vmax.f32 %v34_v2, %v35_v3 }
   0xa   :  { %v37_v5 = vrot.slane %v36_v4, 2 }
   0xc   :  { %v38_v7 = vmax.f32 %v36_v4, %v37_v5  ;;  %v55_v19 = vld [vmem:[#allocation2] sm:$0xff] }
   0xe   :  { %v39_v8 = vrot.slane %v38_v7, 1 }
  0x10   :  { %v40_v10 = vmax.f32 %v38_v7, %v39_v8 }
  0x12   :  { %vm43_vm1 = vcmp.eq.f32.partialorder %v32_v1, %v40_v10 }
  0x13   :  { %v44_v11 = vsel %vm43_vm1, %v42_v9, 8 }
  0x14   :  { %v45_v12 = vsel %vm30_vm0, %v44_v11, 2147483647 }
  0x15   :  { %v46_v13 = vrot.slane %v45_v12, 4 }
  0x17   :  { %vm47_vm2 = vcmp.lt.s32.totalorder %v45_v12, %v46_v13 }
  0x18   :  { %v48_v14 = vsel %vm47_vm2, %v45_v12, %v46_v13 }
  0x19   :  { %v49_v15 = vrot.slane %v48_v14, 2 }
  0x1b   :  { %vm50_vm3 = vcmp.lt.s32.totalorder %v48_v14, %v49_v15 }
  0x1c   :  { %v51_v16 = vsel %vm50_vm3, %v48_v14, %v49_v15 }
  0x1d   :  { %v52_v17 = vrot.slane %v51_v16, 1 }
  0x1f   :  { %vm53_vm4 = vcmp.lt.s32.totalorder %v51_v16, %v52_v17 }
  0x20   :  { %v54_v18 = vsel %vm53_vm4, %v51_v16, %v52_v17 }
  0x21   :  { %vm56_vm5 = vcmp.eq.s32.totalorder %v42_v9, %v54_v18 }
  0x22   :  { %v57_v20 = vsel %vm56_vm5, 1, %v113_v0 }
  0x23   :  { %v58_v21 = vadd.s32 %v57_v20, %v55_v19 }
  0x25   :  { %59 = vst.msk [vmem:[#allocation2] sm:$0xff] %vm30_vm0, %v58_v21 }
  0x2c   :  { %v63_v22 = vld [vmem:[#allocation2] sm:$0xff] }
  0x2d   :  { %v64_v23 = vsel %vm30_vm0, %v63_v22, 0 }
  0x2e   :  { %v66_v24 = vshrl.u32 %v64_v23, 16  ;;  %v65_v26 = vand.u32 65535, %v64_v23 }
  0x30   :  { %v68_v25 = vcvt.s32.f32 %v66_v24  ;;  %v67_v27 = vcvt.s32.f32 %v65_v26 }
  0x32   :  { %71 = vadd.xlane.f32.xlu0 %v68_v25 }
  0x3a   :  { %69 = vadd.xlane.f32.xlu0 %v67_v27 }
  0xa5   :  { %v72_v28 = vpop.xlane.xlu0 %71 }
  0xa6   :  { %v74_v29 = vcvt.f32.s32 %v72_v28 }
  0xa8   :  { %v75_v31 = vshll.u32 %v74_v29, 16 }
  0xad   :  { %v70_v30 = vpop.xlane.xlu0 %69 }
  0xae   :  { %v73_v32 = vcvt.f32.s32 %v70_v30 }
  0xb0   :  { %v76_v33 = vadd.s32 %v75_v31, %v73_v32 }
  0xb2   :  { %78 = vst.msk [vmem:[%s136_s1] sm:$0xff] %vm77_vm6, %v76_v33 }
  0xb3   :  { %83 = vsyncpa [#allocation4], 1 }

</bundles_post_ra>
